<compile_context>
chip_gen: v6e
topology: v6e:2x2x1
jax: 0.10.0
libtpu: 0.0.40
codegen_flags: <defaults>
</compile_context>

<pallas_src>
import jax
import jax.numpy as jnp
from jax import lax
from jax.experimental import pallas as pl
from jax.experimental.pallas import tpu as pltpu  # noqa: F401  (TPU backend)


# ---------------- model hyperparameters (small, consistent with the module) ----
N = 2            # batch
T = 8            # sequence length
H = 32           # hidden_dim (word-embedding dim)
NUM_HEADS = 2
DK = 16          # dim_k == dim_v == dim_q
DFF = 64         # dim_feedforward
VOCAB = 50       # input_size
OUT = 16         # output_size
MAX_LEN = 43
LN_EPS = 1e-5

NT = N * T                   # 16 activation rows
HT = NUM_HEADS * NT          # 32 head-stacked attention rows
OUT_PAD = 128                # lane-dense final projection width (sliced back to OUT)
SEG = 128                    # every weight-slab segment is one full 128-lane tile
EMB_ROWS = 128               # one-hot width / slab sublane count (VOCAB=50 zero-padded)

# 128-lane-aligned segment offsets inside the packed weight slab
_QKV_OFF = 0 * SEG           # (H, 6*DK) with q columns pre-scaled by 1/sqrt(DK)
_PROJ_OFF = 1 * SEG          # (2*DK, H)
_FF1_OFF = 2 * SEG           # (H, DFF)
_FIN_OFF = 3 * SEG           # (H, OUT) zero-padded to 128 output lanes
_FF2_OFF = 4 * SEG           # (DFF, H)
_EMB_OFF = 5 * SEG           # (VOCAB, H) embedding table (rows VOCAB..127 zero)
W_LANES = 6 * SEG            # 768

VEC_ROWS = 64
_POS_ROW = 16                # rows [16,32): static positional tile (NT, H)
_MASK_ROW = 32               # rows [32,64): (HT, HT) additive attention mask


def transformer_kernel(tok_ref, w_ref, vec_ref, out_ref):
    """Whole forward pass over the full (N*T, H) activation slab in one invocation."""

    def layernorm(v, g, b):
        mu = jnp.mean(v, axis=-1, keepdims=True)
        var = jnp.mean((v - mu) * (v - mu), axis=-1, keepdims=True)
        return (v - mu) * lax.rsqrt(var + LN_EPS) * g + b

    # ---- embedding: one-hot (NT,128) x (128,128) MXU matmul + static positional tile --
    tok = tok_ref[...]                                            # (NT, 1) int32
    col = lax.broadcasted_iota(jnp.int32, (NT, EMB_ROWS), 1)
    onehot = (col == tok).astype(jnp.float32)                     # (NT, 128)
    x_full = jnp.dot(onehot, w_ref[:, _EMB_OFF:_EMB_OFF + SEG],
                     preferred_element_type=jnp.float32)          # (NT,128), lanes>=H zero
    x = x_full[:, :H] + vec_ref[_POS_ROW:_POS_ROW + NT, :H]       # (NT, H)

    # ---- fused Q/K/V projection: ONE (NT,H)x(H,128) matmul (scale folded into q) -------
    qkv = (jnp.dot(x, w_ref[:H, _QKV_OFF:_QKV_OFF + SEG],
                   preferred_element_type=jnp.float32)
           + vec_ref[0:1, :])                       # (NT,128): [k1 v1 q1 k2 v2 q2 | 0pad]
    # head-stacked (2*NT, DK) operands: head 1 -> rows [0,NT), head 2 -> rows [NT,2NT)
    k_st = jnp.concatenate([qkv[:, 0 * DK:1 * DK], qkv[:, 3 * DK:4 * DK]], axis=0)
    v_st = jnp.concatenate([qkv[:, 1 * DK:2 * DK], qkv[:, 4 * DK:5 * DK]], axis=0)
    q_st = jnp.concatenate([qkv[:, 2 * DK:3 * DK], qkv[:, 5 * DK:6 * DK]], axis=0)

    # ---- merged-head attention: ONE score matmul + ONE softmax + ONE AV matmul ---------
    # Pre-packed additive mask is block-diagonal over (head, batch); every row keeps
    # exactly T unmasked columns, so the -1e30 entries can never yield a NaN softmax row.
    mask = vec_ref[_MASK_ROW:_MASK_ROW + HT, :HT]                 # (32, 32)
    s = lax.dot_general(q_st, k_st, (((1,), (1,)), ((), ())),
                        preferred_element_type=jnp.float32) + mask
    m = jnp.max(s, axis=-1, keepdims=True)
    e = jnp.exp(s - m)
    # exact reciprocal: EUP has slack here, restores ~1e-6-level accuracy vs approx
    p = e * pl.reciprocal(jnp.sum(e, axis=-1, keepdims=True), approx=False)
    av = jnp.dot(p, v_st, preferred_element_type=jnp.float32)     # (2*NT, DK)

    # ---- head "concat" + projection via the two row-halves of w_proj -------------------
    mh_full = (jnp.dot(av[:NT], w_ref[0:DK, _PROJ_OFF:_PROJ_OFF + SEG],
                       preferred_element_type=jnp.float32)
               + jnp.dot(av[NT:], w_ref[DK:2 * DK, _PROJ_OFF:_PROJ_OFF + SEG],
                         preferred_element_type=jnp.float32))     # (NT, 128)
    mh = mh_full[:, :H] + vec_ref[1:2, :H]
    a1 = layernorm(mh + x, vec_ref[2:3, :H], vec_ref[3:4, :H])    # (NT, H)

    # ---- feedforward --------------------------------------------------------------------
    ff = jnp.maximum(jnp.dot(a1, w_ref[:H, _FF1_OFF:_FF1_OFF + SEG],
                             preferred_element_type=jnp.float32)
                     + vec_ref[4:5, :], 0.0)                      # (NT,128), lanes>=DFF zero
    ff2_full = jnp.dot(ff, w_ref[:, _FF2_OFF:_FF2_OFF + SEG],
                       preferred_element_type=jnp.float32)        # (NT, 128)
    ff2 = ff2_full[:, :H] + vec_ref[5:6, :H]
    a2 = layernorm(ff2 + a1, vec_ref[6:7, :H], vec_ref[7:8, :H])  # (NT, H)

    # ---- final projection (lane-padded to 128 -> single unmasked full-width store) -----
    out_ref[...] = (jnp.dot(a2, w_ref[:H, _FIN_OFF:_FIN_OFF + SEG],
                            preferred_element_type=jnp.float32)
                    + vec_ref[8:9, :])                            # (NT, OUT_PAD)


# ---------------- parameter init (deterministic, Linear weights as (in, out)) ----------
def make_params(key):
    ks = jax.random.split(key, 16)
    p = {}
    p["emb"] = jax.random.normal(ks[0], (VOCAB, H), jnp.float32) * 0.02
    p["pos_emb"] = jax.random.normal(ks[1], (MAX_LEN, H), jnp.float32) * 0.02

    def linear(k, din, dout):
        kw, kb = jax.random.split(k)
        lim = 1.0 / jnp.sqrt(jnp.float32(din))
        w = jax.random.uniform(kw, (din, dout), jnp.float32, -lim, lim)
        b = jax.random.uniform(kb, (1, dout), jnp.float32, -lim, lim)
        return w, b

    p["wk1"], p["bk1"] = linear(ks[2], H, DK)
    p["wv1"], p["bv1"] = linear(ks[3], H, DK)
    p["wq1"], p["bq1"] = linear(ks[4], H, DK)
    p["wk2"], p["bk2"] = linear(ks[5], H, DK)
    p["wv2"], p["bv2"] = linear(ks[6], H, DK)
    p["wq2"], p["bq2"] = linear(ks[7], H, DK)
    p["wproj"], p["bproj"] = linear(ks[8], NUM_HEADS * DK, H)
    p["g_mh"], p["b_mh"] = jnp.ones((1, H), jnp.float32), jnp.zeros((1, H), jnp.float32)
    p["wff1"], p["bff1"] = linear(ks[9], H, DFF)
    p["wff2"], p["bff2"] = linear(ks[10], DFF, H)
    p["g_ff"], p["b_ff"] = jnp.ones((1, H), jnp.float32), jnp.zeros((1, H), jnp.float32)
    p["wfin"], p["bfin"] = linear(ks[11], H, OUT)
    return p


def pack_params(p):
    """ONE-TIME packing (hoisted out of the per-call path).

    Returns:
      w_slab  (128, 768) f32 : six 128-lane-aligned weight segments (QKV with the
              1/sqrt(DK) softmax scale folded into the q columns, proj, ff1, final
              padded to 128 outputs, ff2, embedding table).
      vec_slab (64, 128) f32 : bias / LayerNorm rows, the static positional tile and
              the static (32,32) block-diagonal additive attention mask.
    """
    scale = DK ** -0.5

    w = jnp.zeros((EMB_ROWS, W_LANES), jnp.float32)
    w_qkv = jnp.concatenate([p["wk1"], p["wv1"], p["wq1"] * scale,
                             p["wk2"], p["wv2"], p["wq2"] * scale], axis=1)    # (H, 96)
    w = w.at[:H, _QKV_OFF:_QKV_OFF + 6 * DK].set(w_qkv)
    w = w.at[:NUM_HEADS * DK, _PROJ_OFF:_PROJ_OFF + H].set(p["wproj"])
    w = w.at[:H, _FF1_OFF:_FF1_OFF + DFF].set(p["wff1"])
    w = w.at[:H, _FIN_OFF:_FIN_OFF + OUT].set(p["wfin"])
    w = w.at[:DFF, _FF2_OFF:_FF2_OFF + H].set(p["wff2"])
    w = w.at[:VOCAB, _EMB_OFF:_EMB_OFF + H].set(p["emb"])

    vec = jnp.zeros((VEC_ROWS, 128), jnp.float32)
    b_qkv = jnp.concatenate([p["bk1"], p["bv1"], p["bq1"] * scale,
                             p["bk2"], p["bv2"], p["bq2"] * scale], axis=1)    # (1, 96)
    vec = vec.at[0, :6 * DK].set(b_qkv[0])
    vec = vec.at[1, :H].set(p["bproj"][0])
    vec = vec.at[2, :H].set(p["g_mh"][0])
    vec = vec.at[3, :H].set(p["b_mh"][0])
    vec = vec.at[4, :DFF].set(p["bff1"][0])
    vec = vec.at[5, :H].set(p["bff2"][0])
    vec = vec.at[6, :H].set(p["g_ff"][0])
    vec = vec.at[7, :H].set(p["b_ff"][0])
    vec = vec.at[8, :OUT].set(p["bfin"][0])
    # static positional tile: pos_emb[t] replicated over the batch -> (NT, H)
    vec = vec.at[_POS_ROW:_POS_ROW + NT, :H].set(jnp.tile(p["pos_emb"][:T], (N, 1)))

    # static block-diagonal (head, batch) additive mask for the merged-head attention
    idx = jnp.arange(HT)
    same = ((idx[:, None] // NT == idx[None, :] // NT) &
            ((idx[:, None] % NT) // T == (idx[None, :] % NT) // T))
    # safety: every score row must keep >=1 unmasked column or softmax would NaN
    assert bool(jnp.all(jnp.any(same, axis=1)))
    mask = jnp.where(same, 0.0, -1e30).astype(jnp.float32)
    vec = vec.at[_MASK_ROW:_MASK_ROW + HT, :HT].set(mask)
    return w, vec


@jax.jit
def transformer_translator_forward(tokens, w_slab, vec_slab):
    """Single-dispatch forward: one gridless pallas_call, 3 inputs, 1 lane-dense output."""
    tok = tokens.reshape(NT, 1).astype(jnp.int32)
    out_pad = pl.pallas_call(
        transformer_kernel,
        out_shape=jax.ShapeDtypeStruct((NT, OUT_PAD), jnp.float32),
    )(tok, w_slab, vec_slab)
    return out_pad[:, :OUT].reshape(N, T, OUT)


# ---------------- pure-JAX reference (mirrors the PyTorch forward) ---------------------
def reference_forward(tokens, p):
    word_emb = jnp.take(p["emb"], tokens, axis=0)
    x = word_emb + p["pos_emb"][:tokens.shape[1]][None]

    def lin(v, w, b):
        return v @ w + b

    def sm(s):
        return jax.nn.softmax(s, axis=-1)

    def ln(v, g, b):
        mu = jnp.mean(v, axis=-1, keepdims=True)
        var = jnp.mean((v - mu) ** 2, axis=-1, keepdims=True)
        return (v - mu) / jnp.sqrt(var + LN_EPS) * g + b

    k1 = lin(x, p["wk1"], p["bk1"]); v1 = lin(x, p["wv1"], p["bv1"]); q1 = lin(x, p["wq1"], p["bq1"])
    k2 = lin(x, p["wk2"], p["bk2"]); v2 = lin(x, p["wv2"], p["bv2"]); q2 = lin(x, p["wq2"], p["bq2"])
    scale = 1.0 / jnp.sqrt(jnp.float32(DK))
    h1 = sm(jnp.einsum("ntd,nsd->nts", q1, k1) * scale) @ v1
    h2 = sm(jnp.einsum("ntd,nsd->nts", q2, k2) * scale) @ v2
    mh = lin(jnp.concatenate([h1, h2], axis=-1), p["wproj"], p["bproj"])
    a = ln(mh + x, p["g_mh"], p["b_mh"])
    ff = jnp.maximum(lin(a, p["wff1"], p["bff1"]), 0.0)
    ff = lin(ff, p["wff2"], p["bff2"])
    f = ln(ff + a, p["g_ff"], p["b_ff"])
    return lin(f, p["wfin"], p["bfin"])


if __name__ == "__main__":
    key = jax.random.PRNGKey(0)
    kp, kt = jax.random.split(key)
    params = make_params(kp)
    tokens = jax.random.randint(kt, (N, T), 0, VOCAB, dtype=jnp.int32)

    # one-time packing, deliberately OUTSIDE the jitted per-call path
    w_slab, vec_slab = pack_params(params)
    w_slab, vec_slab = jax.block_until_ready((w_slab, vec_slab))

    out = transformer_translator_forward(tokens, w_slab, vec_slab)
    out = jax.block_until_ready(out)

    ref = reference_forward(tokens, params)
    assert out.shape == (N, T, OUT)
    err = float(jnp.max(jnp.abs(out - ref)))
    # exact softmax reciprocal now -> tolerance only covers in-kernel EUP rsqrt in the
    # LayerNorms and fp32 reassociation from the folded-scale / merged-head reformulation
    assert jnp.allclose(out, ref, atol=5e-4, rtol=5e-4), f"mismatch vs reference: {err}"
    print("KERNEL_OK")
</pallas_src>

<mosaic_0001>
module attributes {stable_mosaic.version = 11 : i64} {
  func.func @transformer_kernel(%arg0: memref<16x1xi32, #tpu.memory_space<vmem>>, %arg1: memref<128x768xf32, #tpu.memory_space<vmem>>, %arg2: memref<64x128xf32, #tpu.memory_space<vmem>>, %arg3: memref<16x128xf32, #tpu.memory_space<vmem>>) attributes {dimension_semantics = [], scalar_prefetch = 0 : i64, scratch_operands = 0 : i64, tpu.core_type = #tpu.core_type<tc>} {
    %c0 = arith.constant 0 : index
    %c0_0 = arith.constant 0 : index
    %0 = vector.load %arg0[%c0, %c0_0] : memref<16x1xi32, #tpu.memory_space<vmem>>, vector<16x1xi32>
    %1 = tpu.iota {dimensions = array<i32: 1>} : vector<16x128xi32>
    %2 = vector.broadcast %0 : vector<16x1xi32> to vector<16x128xi32>
    %3 = arith.cmpi eq, %1, %2 : vector<16x128xi32>
    %4 = arith.extui %3 : vector<16x128xi1> to vector<16x128xi32>
    %5 = arith.sitofp %4 : vector<16x128xi32> to vector<16x128xf32>
    %c0_1 = arith.constant 0 : index
    %c640 = arith.constant 640 : index
    %6 = vector.load %arg1[%c0_1, %c640] : memref<128x768xf32, #tpu.memory_space<vmem>>, vector<128x128xf32>
    %cst = arith.constant dense<0.000000e+00> : vector<16x128xf32>
    %7 = tpu.matmul %5, %6, %cst {dimension_numbers = #tpu.dot_dimension_numbers<[1], [0], [0], [1], [0, 0, 1, 1], [], []>} : vector<16x128xf32>, vector<128x128xf32>, vector<16x128xf32> -> vector<16x128xf32>
    %8 = vector.extract_strided_slice %7 {offsets = [0, 0], sizes = [16, 32], strides = [1, 1]} : vector<16x128xf32> to vector<16x32xf32>
    %c16 = arith.constant 16 : index
    %c0_2 = arith.constant 0 : index
    %9 = vector.load %arg2[%c16, %c0_2] : memref<64x128xf32, #tpu.memory_space<vmem>>, vector<16x32xf32>
    %10 = arith.addf %8, %9 : vector<16x32xf32>
    %c0_3 = arith.constant 0 : index
    %c0_4 = arith.constant 0 : index
    %11 = vector.load %arg1[%c0_3, %c0_4] : memref<128x768xf32, #tpu.memory_space<vmem>>, vector<32x128xf32>
    %cst_5 = arith.constant dense<0.000000e+00> : vector<16x128xf32>
    %12 = tpu.matmul %10, %11, %cst_5 {dimension_numbers = #tpu.dot_dimension_numbers<[1], [0], [0], [1], [0, 0, 1, 1], [], []>} : vector<16x32xf32>, vector<32x128xf32>, vector<16x128xf32> -> vector<16x128xf32>
    %c0_6 = arith.constant 0 : index
    %c0_7 = arith.constant 0 : index
    %13 = vector.load %arg2[%c0_6, %c0_7] : memref<64x128xf32, #tpu.memory_space<vmem>>, vector<1x128xf32>
    %14 = vector.broadcast %13 : vector<1x128xf32> to vector<16x128xf32>
    %15 = arith.addf %12, %14 : vector<16x128xf32>
    %16 = vector.extract_strided_slice %15 {offsets = [0, 0], sizes = [16, 16], strides = [1, 1]} : vector<16x128xf32> to vector<16x16xf32>
    %17 = vector.extract_strided_slice %15 {offsets = [0, 48], sizes = [16, 16], strides = [1, 1]} : vector<16x128xf32> to vector<16x16xf32>
    %18 = tpu.concatenate %16, %17 in 0 : vector<16x16xf32>, vector<16x16xf32> -> vector<32x16xf32>
    %19 = vector.extract_strided_slice %15 {offsets = [0, 16], sizes = [16, 16], strides = [1, 1]} : vector<16x128xf32> to vector<16x16xf32>
    %20 = vector.extract_strided_slice %15 {offsets = [0, 64], sizes = [16, 16], strides = [1, 1]} : vector<16x128xf32> to vector<16x16xf32>
    %21 = tpu.concatenate %19, %20 in 0 : vector<16x16xf32>, vector<16x16xf32> -> vector<32x16xf32>
    %22 = vector.extract_strided_slice %15 {offsets = [0, 32], sizes = [16, 16], strides = [1, 1]} : vector<16x128xf32> to vector<16x16xf32>
    %23 = vector.extract_strided_slice %15 {offsets = [0, 80], sizes = [16, 16], strides = [1, 1]} : vector<16x128xf32> to vector<16x16xf32>
    %24 = tpu.concatenate %22, %23 in 0 : vector<16x16xf32>, vector<16x16xf32> -> vector<32x16xf32>
    %c32 = arith.constant 32 : index
    %c0_8 = arith.constant 0 : index
    %25 = vector.load %arg2[%c32, %c0_8] : memref<64x128xf32, #tpu.memory_space<vmem>>, vector<32x32xf32>
    %cst_9 = arith.constant dense<0.000000e+00> : vector<32x32xf32>
    %26 = tpu.matmul %24, %18, %cst_9 {dimension_numbers = #tpu.dot_dimension_numbers<[1], [1], [0], [0], [0, 0, 1, 0], [], []>} : vector<32x16xf32>, vector<32x16xf32>, vector<32x32xf32> -> vector<32x32xf32>
    %27 = arith.addf %26, %25 : vector<32x32xf32>
    %cst_10 = arith.constant dense<0xFF800000> : vector<32xf32>
    %28 = vector.multi_reduction <maximumf>, %27, %cst_10 [1] : vector<32x32xf32> to vector<32xf32>
    %29 = vector.shape_cast %28 : vector<32xf32> to vector<32x1xf32>
    %30 = vector.broadcast %29 : vector<32x1xf32> to vector<32x32xf32>
    %31 = arith.subf %27, %30 : vector<32x32xf32>
    %32 = math.exp %31 : vector<32x32xf32>
    %cst_11 = arith.constant dense<0.000000e+00> : vector<32xf32>
    %33 = vector.multi_reduction <add>, %32, %cst_11 [1] : vector<32x32xf32> to vector<32xf32>
    %34 = vector.shape_cast %33 : vector<32xf32> to vector<32x1xf32>
    %35 = tpu.reciprocal %34 : vector<32x1xf32> -> vector<32x1xf32>
    %36 = vector.broadcast %35 : vector<32x1xf32> to vector<32x32xf32>
    %37 = arith.mulf %32, %36 : vector<32x32xf32>
    %cst_12 = arith.constant dense<0.000000e+00> : vector<32x16xf32>
    %38 = tpu.matmul %37, %21, %cst_12 {dimension_numbers = #tpu.dot_dimension_numbers<[1], [0], [0], [1], [0, 0, 1, 1], [], []>} : vector<32x32xf32>, vector<32x16xf32>, vector<32x16xf32> -> vector<32x16xf32>
    %39 = vector.extract_strided_slice %38 {offsets = [0, 0], sizes = [16, 16], strides = [1, 1]} : vector<32x16xf32> to vector<16x16xf32>
    %c0_13 = arith.constant 0 : index
    %c128 = arith.constant 128 : index
    %40 = vector.load %arg1[%c0_13, %c128] : memref<128x768xf32, #tpu.memory_space<vmem>>, vector<16x128xf32>
    %cst_14 = arith.constant dense<0.000000e+00> : vector<16x128xf32>
    %41 = tpu.matmul %39, %40, %cst_14 {dimension_numbers = #tpu.dot_dimension_numbers<[1], [0], [0], [1], [0, 0, 1, 1], [], []>} : vector<16x16xf32>, vector<16x128xf32>, vector<16x128xf32> -> vector<16x128xf32>
    %42 = vector.extract_strided_slice %38 {offsets = [16, 0], sizes = [16, 16], strides = [1, 1]} : vector<32x16xf32> to vector<16x16xf32>
    %c16_15 = arith.constant 16 : index
    %c128_16 = arith.constant 128 : index
    %43 = vector.load %arg1[%c16_15, %c128_16] : memref<128x768xf32, #tpu.memory_space<vmem>>, vector<16x128xf32>
    %cst_17 = arith.constant dense<0.000000e+00> : vector<16x128xf32>
    %44 = tpu.matmul %42, %43, %cst_17 {dimension_numbers = #tpu.dot_dimension_numbers<[1], [0], [0], [1], [0, 0, 1, 1], [], []>} : vector<16x16xf32>, vector<16x128xf32>, vector<16x128xf32> -> vector<16x128xf32>
    %45 = arith.addf %41, %44 : vector<16x128xf32>
    %46 = vector.extract_strided_slice %45 {offsets = [0, 0], sizes = [16, 32], strides = [1, 1]} : vector<16x128xf32> to vector<16x32xf32>
    %c1 = arith.constant 1 : index
    %c0_18 = arith.constant 0 : index
    %47 = vector.load %arg2[%c1, %c0_18] : memref<64x128xf32, #tpu.memory_space<vmem>>, vector<1x32xf32>
    %48 = vector.broadcast %47 : vector<1x32xf32> to vector<16x32xf32>
    %49 = arith.addf %46, %48 : vector<16x32xf32>
    %50 = arith.addf %49, %10 : vector<16x32xf32>
    %c2 = arith.constant 2 : index
    %c0_19 = arith.constant 0 : index
    %51 = vector.load %arg2[%c2, %c0_19] : memref<64x128xf32, #tpu.memory_space<vmem>>, vector<1x32xf32>
    %c3 = arith.constant 3 : index
    %c0_20 = arith.constant 0 : index
    %52 = vector.load %arg2[%c3, %c0_20] : memref<64x128xf32, #tpu.memory_space<vmem>>, vector<1x32xf32>
    %cst_21 = arith.constant dense<0.000000e+00> : vector<16xf32>
    %53 = vector.multi_reduction <add>, %50, %cst_21 [1] : vector<16x32xf32> to vector<16xf32>
    %54 = vector.shape_cast %53 : vector<16xf32> to vector<16x1xf32>
    %cst_22 = arith.constant 3.200000e+01 : f32
    %55 = vector.broadcast %cst_22 : f32 to vector<16x1xf32>
    %56 = arith.divf %54, %55 : vector<16x1xf32>
    %57 = vector.broadcast %56 : vector<16x1xf32> to vector<16x32xf32>
    %58 = arith.subf %50, %57 : vector<16x32xf32>
    %59 = vector.broadcast %56 : vector<16x1xf32> to vector<16x32xf32>
    %60 = arith.subf %50, %59 : vector<16x32xf32>
    %61 = arith.mulf %58, %60 : vector<16x32xf32>
    %cst_23 = arith.constant dense<0.000000e+00> : vector<16xf32>
    %62 = vector.multi_reduction <add>, %61, %cst_23 [1] : vector<16x32xf32> to vector<16xf32>
    %63 = vector.shape_cast %62 : vector<16xf32> to vector<16x1xf32>
    %cst_24 = arith.constant 3.200000e+01 : f32
    %64 = vector.broadcast %cst_24 : f32 to vector<16x1xf32>
    %65 = arith.divf %63, %64 : vector<16x1xf32>
    %66 = vector.broadcast %56 : vector<16x1xf32> to vector<16x32xf32>
    %67 = arith.subf %50, %66 : vector<16x32xf32>
    %cst_25 = arith.constant 9.99999974E-6 : f32
    %68 = vector.broadcast %cst_25 : f32 to vector<16x1xf32>
    %69 = arith.addf %65, %68 : vector<16x1xf32>
    %70 = math.rsqrt %69 : vector<16x1xf32>
    %71 = vector.broadcast %70 : vector<16x1xf32> to vector<16x32xf32>
    %72 = arith.mulf %67, %71 : vector<16x32xf32>
    %73 = vector.broadcast %51 : vector<1x32xf32> to vector<16x32xf32>
    %74 = arith.mulf %72, %73 : vector<16x32xf32>
    %75 = vector.broadcast %52 : vector<1x32xf32> to vector<16x32xf32>
    %76 = arith.addf %74, %75 : vector<16x32xf32>
    %c0_26 = arith.constant 0 : index
    %c256 = arith.constant 256 : index
    %77 = vector.load %arg1[%c0_26, %c256] : memref<128x768xf32, #tpu.memory_space<vmem>>, vector<32x128xf32>
    %cst_27 = arith.constant dense<0.000000e+00> : vector<16x128xf32>
    %78 = tpu.matmul %76, %77, %cst_27 {dimension_numbers = #tpu.dot_dimension_numbers<[1], [0], [0], [1], [0, 0, 1, 1], [], []>} : vector<16x32xf32>, vector<32x128xf32>, vector<16x128xf32> -> vector<16x128xf32>
    %c4 = arith.constant 4 : index
    %c0_28 = arith.constant 0 : index
    %79 = vector.load %arg2[%c4, %c0_28] : memref<64x128xf32, #tpu.memory_space<vmem>>, vector<1x128xf32>
    %80 = vector.broadcast %79 : vector<1x128xf32> to vector<16x128xf32>
    %81 = arith.addf %78, %80 : vector<16x128xf32>
    %cst_29 = arith.constant 0.000000e+00 : f32
    %82 = vector.broadcast %cst_29 : f32 to vector<16x128xf32>
    %83 = arith.maximumf %81, %82 : vector<16x128xf32>
    %c0_30 = arith.constant 0 : index
    %c512 = arith.constant 512 : index
    %84 = vector.load %arg1[%c0_30, %c512] : memref<128x768xf32, #tpu.memory_space<vmem>>, vector<128x128xf32>
    %cst_31 = arith.constant dense<0.000000e+00> : vector<16x128xf32>
    %85 = tpu.matmul %83, %84, %cst_31 {dimension_numbers = #tpu.dot_dimension_numbers<[1], [0], [0], [1], [0, 0, 1, 1], [], []>} : vector<16x128xf32>, vector<128x128xf32>, vector<16x128xf32> -> vector<16x128xf32>
    %86 = vector.extract_strided_slice %85 {offsets = [0, 0], sizes = [16, 32], strides = [1, 1]} : vector<16x128xf32> to vector<16x32xf32>
    %c5 = arith.constant 5 : index
    %c0_32 = arith.constant 0 : index
    %87 = vector.load %arg2[%c5, %c0_32] : memref<64x128xf32, #tpu.memory_space<vmem>>, vector<1x32xf32>
    %88 = vector.broadcast %87 : vector<1x32xf32> to vector<16x32xf32>
    %89 = arith.addf %86, %88 : vector<16x32xf32>
    %90 = arith.addf %89, %76 : vector<16x32xf32>
    %c6 = arith.constant 6 : index
    %c0_33 = arith.constant 0 : index
    %91 = vector.load %arg2[%c6, %c0_33] : memref<64x128xf32, #tpu.memory_space<vmem>>, vector<1x32xf32>
    %c7 = arith.constant 7 : index
    %c0_34 = arith.constant 0 : index
    %92 = vector.load %arg2[%c7, %c0_34] : memref<64x128xf32, #tpu.memory_space<vmem>>, vector<1x32xf32>
    %cst_35 = arith.constant dense<0.000000e+00> : vector<16xf32>
    %93 = vector.multi_reduction <add>, %90, %cst_35 [1] : vector<16x32xf32> to vector<16xf32>
    %94 = vector.shape_cast %93 : vector<16xf32> to vector<16x1xf32>
    %cst_36 = arith.constant 3.200000e+01 : f32
    %95 = vector.broadcast %cst_36 : f32 to vector<16x1xf32>
    %96 = arith.divf %94, %95 : vector<16x1xf32>
    %97 = vector.broadcast %96 : vector<16x1xf32> to vector<16x32xf32>
    %98 = arith.subf %90, %97 : vector<16x32xf32>
    %99 = vector.broadcast %96 : vector<16x1xf32> to vector<16x32xf32>
    %100 = arith.subf %90, %99 : vector<16x32xf32>
    %101 = arith.mulf %98, %100 : vector<16x32xf32>
    %cst_37 = arith.constant dense<0.000000e+00> : vector<16xf32>
    %102 = vector.multi_reduction <add>, %101, %cst_37 [1] : vector<16x32xf32> to vector<16xf32>
    %103 = vector.shape_cast %102 : vector<16xf32> to vector<16x1xf32>
    %cst_38 = arith.constant 3.200000e+01 : f32
    %104 = vector.broadcast %cst_38 : f32 to vector<16x1xf32>
    %105 = arith.divf %103, %104 : vector<16x1xf32>
    %106 = vector.broadcast %96 : vector<16x1xf32> to vector<16x32xf32>
    %107 = arith.subf %90, %106 : vector<16x32xf32>
    %cst_39 = arith.constant 9.99999974E-6 : f32
    %108 = vector.broadcast %cst_39 : f32 to vector<16x1xf32>
    %109 = arith.addf %105, %108 : vector<16x1xf32>
    %110 = math.rsqrt %109 : vector<16x1xf32>
    %111 = vector.broadcast %110 : vector<16x1xf32> to vector<16x32xf32>
    %112 = arith.mulf %107, %111 : vector<16x32xf32>
    %113 = vector.broadcast %91 : vector<1x32xf32> to vector<16x32xf32>
    %114 = arith.mulf %112, %113 : vector<16x32xf32>
    %115 = vector.broadcast %92 : vector<1x32xf32> to vector<16x32xf32>
    %116 = arith.addf %114, %115 : vector<16x32xf32>
    %c0_40 = arith.constant 0 : index
    %c384 = arith.constant 384 : index
    %117 = vector.load %arg1[%c0_40, %c384] : memref<128x768xf32, #tpu.memory_space<vmem>>, vector<32x128xf32>
    %cst_41 = arith.constant dense<0.000000e+00> : vector<16x128xf32>
    %118 = tpu.matmul %116, %117, %cst_41 {dimension_numbers = #tpu.dot_dimension_numbers<[1], [0], [0], [1], [0, 0, 1, 1], [], []>} : vector<16x32xf32>, vector<32x128xf32>, vector<16x128xf32> -> vector<16x128xf32>
    %c8 = arith.constant 8 : index
    %c0_42 = arith.constant 0 : index
    %119 = vector.load %arg2[%c8, %c0_42] : memref<64x128xf32, #tpu.memory_space<vmem>>, vector<1x128xf32>
    %120 = vector.broadcast %119 : vector<1x128xf32> to vector<16x128xf32>
    %121 = arith.addf %118, %120 : vector<16x128xf32>
    %c0_43 = arith.constant 0 : index
    %c0_44 = arith.constant 0 : index
    %122 = vector.load %arg3[%c0_43, %c0_44] : memref<16x128xf32, #tpu.memory_space<vmem>>, vector<16x128xf32>
    tpu.vector_store %arg3[%c0_43, %c0_44], %121 {strides = array<i32>} : memref<16x128xf32, #tpu.memory_space<vmem>>, vector<16x128xf32>,
    return
  }
}

</mosaic_0001>

<bundles_post_ra>
// kernel: transformer_translator_forward.1
= control target key start
LH: loop header
LB: loop body
LE: loop exit
PB: predicated region body
PF: predicated region fallthrough
CT: control target
= control target key end

     0   :  { %8 = vsyncpa [#allocation3], 0  ;;  %s1527_s0 = inlined_call_operand.vmem [shape: s32[16,1], index: 0, kind: input, shape index: {}]   ;;  %s1528_s1 = inlined_call_operand.hbm [shape: f32[128,768], index: 1, kind: input, shape index: {}]   ;;  %s1529_s2 = inlined_call_operand.hbm [shape: f32[64,128], index: 2, kind: input, shape index: {}]   ;;  %s1530_s3 = inlined_call_operand.vmem [shape: f32[16,128], index: 3, kind: output, shape index: {}]  }
   0x1   :  { %9 = vsyncpa [#allocation5], 0  ;;  %s1401_s12 = smov [#allocation2]  }
   0x2   :  { %s17_s13 = sshll.u32 %s1401_s12, 4  ;;  %s18_s13 = int_to_ptr.vmem [resolvable:$true] %s17_s13 }
   0x3   :  { %s1365_s14 = scalar_lea.vmem %s18_s13, 12288  ;;  %p1370_p1 = scmp.lt.s32.totalorder %s18_s13, %s18_s13 }
   0x4   :  { %p1366_p0 = scmp.ne.s32.totalorder %s18_s13, %s1365_s14  ;;  %p1371_p2 = scmp.lt.s32.totalorder %s1365_s14, %s1365_s14 }
   0x6   :  { %p1372_p3 = por %p1371_p2, %p1370_p1 }
   0x8   :  { %p1373_p4 = pnand %p1372_p3, %p1366_p0 }
   0xa   :  { %1376 = shalt.err (!%p1373_p4)
}
   0xb   :  { %s1402_s15 = smov 768   ;;  %s1403_s16 = smov 48  }
   0xc   :  { %23 = dma.hbm_to_vmem [thread:$0]  %s1528_s1, 12288, %s18_s13, [#allocation3], %s1402_s15, %s1402_s15, %s1403_s16  }
   0xd   :  { %s1404_s19 = smov [#allocation4]  }
   0xe   :  { %s29_s20 = sshll.u32 %s1404_s19, 4  ;;  %s30_s20 = int_to_ptr.vmem [resolvable:$true] %s29_s20 }
   0xf   :  { %s1385_s21 = scalar_lea.vmem %s30_s20, 1024  ;;  %p1390_p6 = scmp.lt.s32.totalorder %s30_s20, %s30_s20 }
  0x10   :  { %p1386_p5 = scmp.ne.s32.totalorder %s30_s20, %s1385_s21  ;;  %p1391_p7 = scmp.lt.s32.totalorder %s1385_s21, %s1385_s21 }
  0x12   :  { %p1392_p8 = por %p1391_p7, %p1390_p6 }
  0x14   :  { %p1393_p9 = pnand %p1392_p8, %p1386_p5 }
  0x16   :  { %1396 = shalt.err (!%p1393_p9)
}
  0x17   :  { %s1405_s22 = smov 128   ;;  %s1406_s23 = smov 8  }
  0x18   :  { %35 = dma.hbm_to_vmem [thread:$0]  %s1529_s2, 1024, %s30_s20, [#allocation5], %s1405_s22, %s1405_s22, %s1406_s23  }
  0x19   :  { %1397 = dma.done.wait [#allocation3], 12288  }
  0x1a   :  { %1398 = vsyncadd [#allocation3], 4294955008 }
  0x1b   :  { %1399 = dma.done.wait [#allocation5], 1024  }
  0x1c   :  { %1400 = vsyncadd [#allocation5], 4294966272  ;;  %v1407_v0 = vmov 0   ;;  %v42_v1 = vld [vmem:[%s1527_s0] sm:$0xff]  ;;  %v73_v2 = vld [vmem:[#allocation2 + $0x2f8] sm:$0xff]  ;;  %v44_v20 = vlaneseq  ;;  %v1408_v23 = vmov 1.0  }
  0x1d   :  { %1332 = vset.pattern.permute.xlu0 %v1407_v0  ;;  %1176 = vmatprep.subr.mxu0 %v73_v2  ;;  %v72_v3 = vld [vmem:[#allocation2 + $0x2c8] sm:$0xff]  ;;  %v71_v5 = vld [vmem:[#allocation2 + $0x298] sm:$0xff]  ;;  %v156_v8 = vld [vmem:[#allocation2 + $0x90] sm:$0xff]  ;;  %vm162_vm2 = vcmask 261120   ;;  %s1410_s2 = smov 80   ;;  %vm262_vm3 = vcmask 130048  }
  0x1e   :  { %47 = vperm.xlu0 %1332, %v42_v1   ;;  %v43_v4 = vld [vmem:[%s1527_s0 + $0x8] sm:$0xff]  ;;  %1177 = vmatpush3.msra.mxu0 %v73_v2  ;;  %v69_v7 = vld [vmem:[#allocation2 + $0x238] sm:$0xff]  ;;  %v45_v21 = vand.u32 127, %v44_v20  ;;  %v155_v25 = vld [vmem:[#allocation2 + $0x60] sm:$0xff]  ;;  %s1409_s0 = smov 96   ;;  %s1411_s29 = smov 112  }
  0x1f   :  { %1178 = vmatprep.subr.mxu0 %v72_v3  ;;  %v70_v6 = vld [vmem:[#allocation2 + $0x268] sm:$0xff]  ;;  %1211 = vmatprep.subr.mxu1 %v156_v8  ;;  %v67_v10 = vld [vmem:[#allocation2 + $0x1d8] sm:$0xff]  ;;  %v154_v26 = vld [vmem:[#allocation2 + $0x30] sm:$0xff] }
  0x20   :  { %1179 = vmatpush3.msra.mxu0 %v72_v3  ;;  %v68_v9 = vld [vmem:[#allocation2 + $0x208] sm:$0xff]  ;;  %1212 = vmatpush3.msra.mxu1 %v156_v8  ;;  %v65_v12 = vld [vmem:[#allocation2 + $0x178] sm:$0xff]  ;;  %v153_v27 = vld [vmem:[#allocation2] sm:$0xff] }
  0x21   :  { %1180 = vmatprep.subr.mxu0 %v71_v5  ;;  %v66_v11 = vld [vmem:[#allocation2 + $0x1a8] sm:$0xff]  ;;  %v63_v14 = vld [vmem:[#allocation2 + $0x118] sm:$0xff]  ;;  %1213 = vmatprep.subr.mxu1 %v155_v25  ;;  %v149_v29 = vld [vmem:[#allocation4 + $0x10] sm:$0xff] }
  0x22   :  { %50 = vperm.xlu0 %1332, %v43_v4   ;;  %1181 = vmatpush3.msra.mxu0 %v71_v5  ;;  %v64_v13 = vld [vmem:[#allocation2 + $0x148] sm:$0xff]  ;;  %v61_v16 = vld [vmem:[#allocation2 + $0xb8] sm:$0xff]  ;;  %v1067_v35 = vld [vmem:[#allocation4] ss:$0 sm:$0xff] }
  0x23   :  { %1182 = vmatprep.subr.mxu0 %v70_v6  ;;  %v62_v15 = vld [vmem:[#allocation2 + $0xe8] sm:$0xff]  ;;  %v59_v18 = vld [vmem:[#allocation2 + $0x58] sm:$0xff]  ;;  %1214 = vmatpush3.msra.mxu1 %v155_v25  ;;  %v250_v47 = vld [vmem:[#allocation4 + $0x20] sm:$0xff] }
  0x24   :  { %1183 = vmatpush3.msra.mxu0 %v70_v6  ;;  %v60_v17 = vld [vmem:[#allocation2 + $0x88] sm:$0xff]  ;;  %1215 = vmatprep.subr.mxu1 %v154_v26  ;;  %v150_v30 = vld [vmem:[#allocation4 + $0x18] sm:$0xff]  ;;  %v252_v54 = vld [vmem:[#allocation4 + $0x30] sm:$0xff] }
  0x25   :  { %1184 = vmatprep.subr.mxu0 %v69_v7  ;;  %v58_v19 = vld [vmem:[#allocation2 + $0x28] sm:$0xff]  ;;  %1216 = vmatpush3.msra.mxu1 %v154_v26  ;;  %v253_v55 = vld [vmem:[#allocation4 + $0x38] sm:$0xff] }
  0x26   :  { %1185 = vmatpush3.msra.mxu0 %v69_v7  ;;  %1217 = vmatprep.subr.mxu1 %v153_v27  ;;  %v251_v45 = vld [vmem:[#allocation4 + $0x28] sm:$0xff] }
  0x27   :  { %1186 = vmatprep.subr.mxu0 %v68_v9  ;;  %1218 = vmatpush3.msra.mxu1 %v153_v27 }
  0x28   :  { %1187 = vmatpush3.msra.mxu0 %v68_v9 }
  0x29   :  { %1188 = vmatprep.subr.mxu0 %v67_v10 }
  0x2a   :  { %1189 = vmatpush3.msra.mxu0 %v67_v10 }
  0x2b   :  { %1190 = vmatprep.subr.mxu0 %v66_v11 }
  0x2c   :  { %1191 = vmatpush3.msra.mxu0 %v66_v11 }
  0x2d   :  { %1192 = vmatprep.subr.mxu0 %v65_v12 }
  0x2e   :  { %1193 = vmatpush3.msra.mxu0 %v65_v12 }
  0x2f   :  { %1194 = vmatprep.subr.mxu0 %v64_v13 }
  0x30   :  { %1195 = vmatpush3.msra.mxu0 %v64_v13 }
  0x31   :  { %1196 = vmatprep.subr.mxu0 %v63_v14 }
  0x32   :  { %1197 = vmatpush3.msra.mxu0 %v63_v14 }
  0x33   :  { %1198 = vmatprep.subr.mxu0 %v62_v15 }
  0x34   :  { %1199 = vmatpush3.msra.mxu0 %v62_v15 }
  0x35   :  { %1200 = vmatprep.subr.mxu0 %v61_v16 }
  0x36   :  { %1201 = vmatpush3.msra.mxu0 %v61_v16 }
  0x37   :  { %1202 = vmatprep.subr.mxu0 %v60_v17 }
  0x38   :  { %1203 = vmatpush3.msra.mxu0 %v60_v17 }
  0x39   :  { %1204 = vmatprep.subr.mxu0 %v59_v18 }
  0x3a   :  { %1205 = vmatpush3.msra.mxu0 %v59_v18 }
  0x3b   :  { %1206 = vmatprep.subr.mxu0 %v58_v19 }
  0x3c   :  { %1207 = vmatpush3.msra.mxu0 %v58_v19 }
  0x99   :  { %v48_v22 = vpop.permute.xlu0 %47 }
  0x9a   :  { %vm52_vm0 = vcmp.eq.s32.totalorder %v45_v21, %v48_v22 }
  0x9b   :  { %1208 = vmatprep.mubr.msk.f32.mxu0 %vm52_vm0, %v1408_v23 }
  0x9d   :  { %v51_v24 = vpop.permute.xlu0 %50 }
  0x9e   :  { %vm53_vm1 = vcmp.eq.s32.totalorder %v45_v21, %v51_v24 }
  0x9f   :  { %1209 = vmatmul.mubr.msk.f32.vlgmr.msra.gmra.mxu0 %vm53_vm1, %v1408_v23 }
 0x15f   :  { %v1210_v28 = vpop.f32.mrf.mxu0 }
 0x160   :  { %v1446_v33 = vadd.f32 %v1210_v28, %v150_v30 }
 0x161   :  { %v140_v31 = vpop.f32.mrf.mxu0 }
 0x162   :  { %v1444_v32 = vadd.f32 %v149_v29, %v140_v31 }
 0x164   :  { %1219 = vmatprep.mubr.msk.f32.mxu1 %vm162_vm2, %v1444_v32 }
 0x165   :  { %1220 = vmatmul.mubr.msk.f32.vlgmr.msra.gmra.mxu1 %vm162_vm2, %v1446_v33 }
 0x225   :  { %v1221_v34 = vpop.f32.mrf.mxu1 }
 0x226   :  { %v241_v38 = vadd.f32 %v1221_v34, %v1067_v35 }
 0x227   :  { %v235_v36 = vpop.f32.mrf.mxu1 }
 0x228   :  { %v1452_v37 = vadd.f32 %v1067_v35, %v235_v36  ;;  %v520_v35 = vld [vmem:[#allocation2 + $0x98] sm:$0xff]  ;;  %v519_v36 = vld [vmem:[#allocation2 + $0x68] sm:$0xff] }
 0x22a   :  { %254 = vrot.lane.b32.xlu0 %v1452_v37, %s1409_s0  ;;  %246 = vrot.lane.b32.xlu1 %v1452_v37, %s1410_s2 }
 0x22e   :  { %248 = vrot.lane.b32.xlu1 %v241_v38, %s1410_s2 }
 0x232   :  { %256 = vrot.lane.b32.xlu1 %v241_v38, %s1409_s0 }
 0x29c   :  { %v255_v39 = vpop.permute.xlu0 %254  ;;  %v1456_v40 = vpop.permute.xlu1 %246 }
 0x29d   :  { %1230 = vmatprep.mubr.msk.f32.mxu1 %vm262_vm3, %v255_v39  ;;  %258 = vrot.lane.b32.xlu0 %v1456_v40, %s1409_s0 }
 0x2a0   :  { %v249_v41 = vpop.permute.xlu1 %248 }
 0x2a1   :  { %1222 = vmatprep.subr.msk.mxu1 %vm262_vm3, %v249_v41  ;;  %260 = vrot.lane.b32.xlu1 %v249_v41, %s1409_s0 }
 0x2a2   :  { %1223 = vmatpush3.xpose.msk.msra.mxu1 %vm262_vm3, %v249_v41 }
 0x2a3   :  { %1224 = vmatprep.subr.msk.mxu1 %vm262_vm3, %v1456_v40 }
 0x2a4   :  { %v257_v42 = vpop.permute.xlu1 %256 }
 0x2a6   :  { %1225 = vmatpush3.xpose.msk.msra.mxu1 %vm262_vm3, %v1456_v40 }
 0x2a7   :  { %1226 = vmatprep.subr.msk.mxu1 %vm262_vm3, %v241_v38 }
 0x2aa   :  { %1227 = vmatpush3.xpose.msk.msra.mxu1 %vm262_vm3, %v241_v38 }
 0x2ab   :  { %1228 = vmatprep.subr.msk.mxu1 %vm262_vm3, %v1452_v37 }
 0x2ae   :  { %1229 = vmatpush3.xpose.msk.msra.mxu1 %vm262_vm3, %v1452_v37 }
 0x2b1   :  { %1231 = vmatmul.mubr.msk.f32.vlgmr.msra.gmra.mxu1 %vm262_vm3, %v257_v42  ;;  %v517_v42 = vld [vmem:[#allocation2 + $0x8] sm:$0xff] }
 0x30f   :  { %v259_v43 = vpop.permute.xlu0 %258 }
 0x310   :  { %1233 = vmatprep.mubr.msk.f32.mxu1 %vm262_vm3, %v259_v43 }
 0x313   :  { %v261_v44 = vpop.permute.xlu1 %260 }
 0x314   :  { %1234 = vmatmul.mubr.msk.f32.gmra.mxu1 %vm262_vm3, %v261_v44 }
 0x371   :  { %v1232_v46 = vpop.f32.mrf.mxu1 }
 0x372   :  { %v351_v48 = vadd.f32 %v1232_v46, %v251_v45  ;;  %v1086_v46 = vld [vmem:[#allocation4 + $0x1] ss:$0 sm:$0xff] }
 0x373   :  { %v345_v49 = vpop.f32.mrf.mxu1 }
 0x374   :  { %v346_v50 = vadd.f32 %v345_v49, %v250_v47  ;;  %v367_v51 = vsel %vm162_vm2, %v351_v48, -inf }
 0x375   :  { %368 = vmax.xlane.f32.xlu1 %v367_v51 }
 0x376   :  { %v364_v52 = vsel %vm162_vm2, %v346_v50, -inf }
 0x377   :  { %365 = vmax.xlane.f32.xlu0 %v364_v52 }
 0x386   :  { %414 = vrot.lane.b32.xlu1 %v249_v41, %s1411_s29 }
 0x3d4   :  { %v1235_v53 = vpop.f32.mrf.mxu1 }
 0x3d5   :  { %v361_v58 = vadd.f32 %v1235_v53, %v253_v55 }
 0x3d6   :  { %v355_v56 = vpop.f32.mrf.mxu1 }
 0x3d7   :  { %v356_v57 = vadd.f32 %v355_v56, %v252_v54  ;;  %v373_v60 = vsel %vm162_vm2, %v361_v58, -inf }
 0x3d9   :  { %v370_v59 = vsel %vm162_vm2, %v356_v57, -inf }
 0x3da   :  { %371 = vmax.xlane.f32.xlu0 %v370_v59 }
 0x3de   :  { %374 = vmax.xlane.f32.xlu0 %v373_v60 }
 0x3fe   :  { %v369_v61 = vpop.xlane.xlu1 %368 }
 0x3ff   :  { %v377_v62 = vsub.f32 %v351_v48, %v369_v61 }
 0x400   :  { %v366_v63 = vpop.xlane.xlu0 %365 }
 0x401   :  { %v382_v0 = vmul.f32 1.442695, %v377_v62  ;;  %v376_v1 = vsub.f32 %v346_v50, %v366_v63 }
 0x402   :  { %v415_v2 = vpop.permute.xlu1 %414 }
 0x403   :  { %1333 = vpow2.f32 %v382_v0  ;;  %v380_v3 = vmul.f32 1.442695, %v376_v1  ;;  %1236 = vmatprep.subr.mxu1 %v415_v2  ;;  %v736_v0 = vld [vmem:[#allocation2 + $0xa0] sm:$0xff]  ;;  %v735_v1 = vld [vmem:[#allocation2 + $0x70] sm:$0xff] }
 0x404   :  { %1237 = vmatpush3.msra.mxu1 %v415_v2  ;;  %v734_v2 = vld [vmem:[#allocation2 + $0x40] sm:$0xff] }
 0x405   :  { %1335 = vpow2.f32 %v380_v3  ;;  %v733_v3 = vld [vmem:[#allocation2 + $0x10] sm:$0xff] }
 0x410   :  { %v1334_v4 = vpop.eup %1333 }
 0x411   :  { %v391_v5 = vsel %vm162_vm2, %v1334_v4, 0.0 }
 0x412   :  { %v1336_v6 = vpop.eup %1335  ;;  %392 = vadd.xlane.f32.xlu0 %v391_v5  ;;  %v839_v5 = vld [vmem:[#allocation2 + $0x2c0] sm:$0xff] }
 0x413   :  { %v388_v7 = vsel %vm162_vm2, %v1336_v6, 0.0 }
 0x414   :  { %389 = vadd.xlane.f32.xlu1 %v388_v7  ;;  %v837_v7 = vld [vmem:[#allocation2 + $0x260] sm:$0xff] }
 0x425   :  { %410 = vrot.lane.b32.xlu1 %v241_v38, %s1411_s29 }
 0x463   :  { %v372_v8 = vpop.xlane.xlu0 %371 }
 0x464   :  { %v378_v9 = vsub.f32 %v356_v57, %v372_v8  ;;  %v836_v8 = vld [vmem:[#allocation2 + $0x230] sm:$0xff] }
 0x466   :  { %v384_v10 = vmul.f32 1.442695, %v378_v9  ;;  %v835_v9 = vld [vmem:[#allocation2 + $0x200] sm:$0xff] }
 0x467   :  { %v375_v11 = vpop.xlane.xlu0 %374 }
 0x468   :  { %1337 = vpow2.f32 %v384_v10  ;;  %v379_v12 = vsub.f32 %v361_v58, %v375_v11  ;;  %v834_v10 = vld [vmem:[#allocation2 + $0x1d0] sm:$0xff]  ;;  %v833_v11 = vld [vmem:[#allocation2 + $0x1a0] sm:$0xff] }
 0x46a   :  { %v386_v13 = vmul.f32 1.442695, %v379_v12  ;;  %v832_v12 = vld [vmem:[#allocation2 + $0x170] sm:$0xff] }
 0x46c   :  { %1339 = vpow2.f32 %v386_v13  ;;  %v831_v13 = vld [vmem:[#allocation2 + $0x140] sm:$0xff] }
 0x475   :  { %v1338_v14 = vpop.eup %1337 }
 0x476   :  { %v394_v15 = vsel %vm162_vm2, %v1338_v14, 0.0 }
 0x477   :  { %395 = vadd.xlane.f32.xlu1 %v394_v15  ;;  %v829_v15 = vld [vmem:[#allocation2 + $0xe0] sm:$0xff] }
 0x479   :  { %v1340_v16 = vpop.eup %1339 }
 0x47a   :  { %v397_v17 = vsel %vm162_vm2, %v1340_v16, 0.0 }
 0x47b   :  { %398 = vadd.xlane.f32.xlu0 %v397_v17 }
 0x488   :  { %408 = vrot.lane.b32.xlu1 %v1452_v37, %s1411_s29  ;;  %v518_v37 = vld [vmem:[#allocation2 + $0x38] sm:$0xff] }
 0x491   :  { %412 = vrot.lane.b32.xlu0 %v1456_v40, %s1411_s29 }
 0x49b   :  { %v393_v21 = vpop.xlane.xlu0 %392 }
 0x49d   :  { %v390_v18 = vpop.xlane.xlu1 %389 }
 0x49e   :  { %1341 = vrcp.f32 %v390_v18 }
 0x49f   :  { %1343 = vrcp.f32 %v393_v21 }
 0x4a1   :  { %v411_v22 = vpop.permute.xlu1 %410 }
 0x4ab   :  { %v1342_v19 = vpop.eup %1341 }
 0x4ac   :  { %v404_v20 = vmul.f32 %v1342_v19, %v1336_v6  ;;  %v1344_v26 = vpop.eup %1343  ;;  %v838_v6 = vld [vmem:[#allocation2 + $0x290] sm:$0xff] }
 0x4ad   :  { %v405_v28 = vmul.f32 %v1344_v26, %v1334_v4  ;;  %v840_v4 = vld [vmem:[#allocation2 + $0x2f0] sm:$0xff] }
 0x4ae   :  { %1244 = vmatprep.mubr.msk.f32.mxu1 %vm162_vm2, %v404_v20  ;;  %1275 = vmatprep.subr.mxu0 %v840_v4 }
 0x4af   :  { %1276 = vmatpush3.msra.mxu0 %v840_v4 }
 0x4b0   :  { %1277 = vmatprep.subr.mxu0 %v839_v5 }
 0x4b1   :  { %1278 = vmatpush3.msra.mxu0 %v839_v5 }
 0x4b2   :  { %1279 = vmatprep.subr.mxu0 %v838_v6 }
 0x4b3   :  { %1280 = vmatpush3.msra.mxu0 %v838_v6 }
 0x4b4   :  { %1281 = vmatprep.subr.mxu0 %v837_v7 }
 0x4b5   :  { %1282 = vmatpush3.msra.mxu0 %v837_v7 }
 0x4b6   :  { %1283 = vmatprep.subr.mxu0 %v836_v8 }
 0x4b7   :  { %1284 = vmatpush3.msra.mxu0 %v836_v8 }
 0x4b8   :  { %1285 = vmatprep.subr.mxu0 %v835_v9 }
 0x4b9   :  { %1286 = vmatpush3.msra.mxu0 %v835_v9  ;;  %v1093_v9 = vld [vmem:[#allocation4 + $0x6] ss:$0 sm:$0xff] }
 0x4ba   :  { %1287 = vmatprep.subr.mxu0 %v834_v10 }
 0x4bb   :  { %1288 = vmatpush3.msra.mxu0 %v834_v10 }
 0x4bc   :  { %1289 = vmatprep.subr.mxu0 %v833_v11 }
 0x4bd   :  { %1290 = vmatpush3.msra.mxu0 %v833_v11 }
 0x4be   :  { %1291 = vmatprep.subr.mxu0 %v832_v12 }
 0x4bf   :  { %1292 = vmatpush3.msra.mxu0 %v832_v12 }
 0x4c0   :  { %1293 = vmatprep.subr.mxu0 %v831_v13 }
 0x4c1   :  { %1294 = vmatpush3.msra.mxu0 %v831_v13 }
 0x500   :  { %v396_v23 = vpop.xlane.xlu1 %395 }
 0x501   :  { %1345 = vrcp.f32 %v396_v23  ;;  %v1087_v23 = vld [vmem:[#allocation4 + $0x2] ss:$0 sm:$0xff] }
 0x504   :  { %v399_v24 = vpop.xlane.xlu0 %398  ;;  %v409_v27 = vpop.permute.xlu1 %408 }
 0x505   :  { %1347 = vrcp.f32 %v399_v24 }
 0x508   :  { %v413_v25 = vpop.permute.xlu0 %412 }
 0x509   :  { %1238 = vmatprep.subr.mxu1 %v413_v25 }
 0x50a   :  { %1239 = vmatpush3.msra.mxu1 %v413_v25  ;;  %v1088_v25 = vld [vmem:[#allocation4 + $0x3] ss:$0 sm:$0xff] }
 0x50b   :  { %1240 = vmatprep.subr.mxu1 %v411_v22 }
 0x50c   :  { %1241 = vmatpush3.msra.mxu1 %v411_v22 }
 0x50d   :  { %1242 = vmatprep.subr.mxu1 %v409_v27 }
 0x50e   :  { %v1346_v29 = vpop.eup %1345  ;;  %1243 = vmatpush3.msra.mxu1 %v409_v27 }
 0x50f   :  { %1245 = vmatmul.mubr.msk.f32.vlgmr.msra.gmra.mxu1 %vm162_vm2, %v405_v28  ;;  %v406_v30 = vmul.f32 %v1346_v29, %v1338_v14  ;;  %1250 = vmatprep.subr.mxu1 %v520_v35  ;;  %v830_v14 = vld [vmem:[#allocation2 + $0x110] sm:$0xff] }
 0x510   :  { %1251 = vmatpush3.msra.mxu1 %v520_v35  ;;  %1295 = vmatprep.subr.mxu0 %v830_v14  ;;  %v827_v35 = vld [vmem:[#allocation2 + $0x80] sm:$0xff] }
 0x511   :  { %1247 = vmatprep.mubr.msk.f32.mxu1 %vm162_vm2, %v406_v30  ;;  %1252 = vmatprep.subr.mxu1 %v519_v36 }
 0x512   :  { %v1348_v31 = vpop.eup %1347  ;;  %1253 = vmatpush3.msra.mxu1 %v519_v36  ;;  %1296 = vmatpush3.msra.mxu0 %v830_v14  ;;  %v826_v36 = vld [vmem:[#allocation2 + $0x50] sm:$0xff]  ;;  %v1094_v14 = vld [vmem:[#allocation4 + $0x7] ss:$0 sm:$0xff] }
 0x513   :  { %v407_v34 = vmul.f32 %v1348_v31, %v1340_v16  ;;  %1257 = vmatprep.subr.mxu1 %v518_v37  ;;  %1297 = vmatprep.subr.mxu0 %v829_v15 }
 0x514   :  { %1298 = vmatpush3.msra.mxu0 %v829_v15 }
 0x515   :  { %1248 = vmatmul.mubr.msk.f32.gmra.mxu1 %vm162_vm2, %v407_v34  ;;  %v828_v34 = vld [vmem:[#allocation2 + $0xb0] sm:$0xff] }
 0x516   :  { %1299 = vmatprep.subr.mxu0 %v828_v34 }
 0x517   :  { %1300 = vmatpush3.msra.mxu0 %v828_v34 }
 0x518   :  { %1301 = vmatprep.subr.mxu0 %v827_v35 }
 0x519   :  { %1302 = vmatpush3.msra.mxu0 %v827_v35 }
 0x51a   :  { %1303 = vmatprep.subr.mxu0 %v826_v36 }
 0x51b   :  { %1304 = vmatpush3.msra.mxu0 %v826_v36 }
 0x5cf   :  { %v1246_v38 = vpop.f32.mrf.mxu1 }
 0x5d1   :  { %v498_v39 = vpop.f32.mrf.mxu1 }
 0x5d5   :  { %v1249_v40 = vpop.f32.mrf.mxu1 }
 0x5d7   :  { %v508_v41 = vpop.f32.mrf.mxu1 }
 0x5d8   :  { %1254 = vmatprep.mubr.msk.f32.mxu1 %vm262_vm3, %v508_v41 }
 0x5d9   :  { %1255 = vmatmul.mubr.msk.f32.vlgmr.msra.gmra.mxu1 %vm262_vm3, %v1249_v40 }
 0x5da   :  { %1258 = vmatpush3.msra.mxu1 %v518_v37  ;;  %1261 = vmatprep.mubr.msk.f32.mxu1 %vm262_vm3, %v498_v39  ;;  %v825_v37 = vld [vmem:[#allocation2 + $0x20] sm:$0xff] }
 0x5db   :  { %1259 = vmatprep.subr.mxu1 %v517_v42  ;;  %1305 = vmatprep.subr.mxu0 %v825_v37 }
 0x5dc   :  { %1260 = vmatpush3.msra.mxu1 %v517_v42  ;;  %1306 = vmatpush3.msra.mxu0 %v825_v37 }
 0x5dd   :  { %1262 = vmatmul.mubr.msk.f32.vlgmr.msra.gmra.mxu1 %vm262_vm3, %v1246_v38  ;;  %1264 = vmatprep.subr.mxu1 %v736_v0  ;;  %v1089_v38 = vld [vmem:[#allocation4 + $0x4] ss:$0 sm:$0xff] }
 0x5de   :  { %1265 = vmatpush3.msra.mxu1 %v736_v0  ;;  %v966_v0 = vld [vmem:[#allocation2 + $0x48] sm:$0xff] }
 0x5df   :  { %1266 = vmatprep.subr.mxu1 %v735_v1 }
 0x5e0   :  { %1267 = vmatpush3.msra.mxu1 %v735_v1  ;;  %v965_v1 = vld [vmem:[#allocation2 + $0x18] sm:$0xff] }
 0x5e1   :  { %1268 = vmatprep.subr.mxu1 %v734_v2 }
 0x5e2   :  { %1269 = vmatpush3.msra.mxu1 %v734_v2 }
 0x5e3   :  { %1270 = vmatprep.subr.mxu1 %v733_v3 }
 0x5e4   :  { %1271 = vmatpush3.msra.mxu1 %v733_v3 }
 0x699   :  { %v1256_v43 = vpop.f32.mrf.mxu1 }
 0x69b   :  { %v593_v44 = vpop.f32.mrf.mxu1 }
 0x69d   :  { %v1263_v45 = vpop.f32.mrf.mxu1 }
 0x69e   :  { %v680_v47 = vadd.f32 %v1263_v45, %v1256_v43  ;;  %v1092_v45 = vld [vmem:[#allocation4 + $0x5] ss:$0 sm:$0xff] }
 0x69f   :  { %v674_v48 = vpop.f32.mrf.mxu1 }
 0x6a0   :  { %v689_v49 = vadd.f32 %v1086_v46, %v680_v47  ;;  %v675_v50 = vadd.f32 %v674_v48, %v593_v44 }
 0x6a2   :  { %v688_v51 = vadd.f32 %v1086_v46, %v675_v50  ;;  %v691_v52 = vadd.f32 %v689_v49, %v1446_v33 }
 0x6a4   :  { %v697_v53 = vsel %vm162_vm2, %v691_v52, 0.0  ;;  %v690_v54 = vadd.f32 %v688_v51, %v1444_v32 }
 0x6a5   :  { %698 = vadd.xlane.f32.xlu1 %v697_v53 }
 0x6a6   :  { %v694_v55 = vsel %vm162_vm2, %v690_v54, 0.0 }
 0x6a7   :  { %695 = vadd.xlane.f32.xlu0 %v694_v55 }
 0x72e   :  { %v699_v56 = vpop.xlane.xlu1 %698 }
 0x72f   :  { %v702_v57 = vmul.f32 0.03125, %v699_v56 }
 0x730   :  { %v696_v58 = vpop.xlane.xlu0 %695 }
 0x731   :  { %v701_v59 = vmul.f32 0.03125, %v696_v58  ;;  %v1501_v60 = vsub.f32 %v691_v52, %v702_v57 }
 0x733   :  { %v1503_v61 = vsub.f32 %v690_v54, %v701_v59  ;;  %v706_v32 = vmul.f32 %v1501_v60, %v1501_v60 }
 0x735   :  { %v705_v62 = vmul.f32 %v1503_v61, %v1503_v61  ;;  %v710_v63 = vsel %vm162_vm2, %v706_v32, 0.0  ;;  %v968_v32 = vld [vmem:[#allocation2 + $0xa8] sm:$0xff] }
 0x736   :  { %1310 = vmatprep.subr.mxu1 %v968_v32 }
 0x737   :  { %v707_v33 = vsel %vm162_vm2, %v705_v62, 0.0 }
 0x738   :  { %708 = vadd.xlane.f32.xlu0 %v707_v33 }
 0x73c   :  { %711 = vadd.xlane.f32.xlu0 %v710_v63  ;;  %v967_v63 = vld [vmem:[#allocation2 + $0x78] sm:$0xff] }
 0x7c1   :  { %v709_v16 = vpop.xlane.xlu0 %708 }
 0x7c2   :  { %v713_v17 = vmul.f32 0.03125, %v709_v16 }
 0x7c4   :  { %v715_v18 = vadd.f32 1e-05, %v713_v17 }
 0x7c5   :  { %v712_v19 = vpop.xlane.xlu0 %711 }
 0x7c6   :  { %1349 = vrsqrt.f32 %v715_v18  ;;  %v714_v20 = vmul.f32 0.03125, %v712_v19  ;;  %v1095_v18 = vld [vmem:[#allocation4 + $0x8] ss:$0 sm:$0xff] }
 0x7c8   :  { %v716_v21 = vadd.f32 1e-05, %v714_v20 }
 0x7ca   :  { %1351 = vrsqrt.f32 %v716_v21 }
 0x7d3   :  { %v1350_v22 = vpop.eup %1349 }
 0x7d4   :  { %v719_v24 = vmul.f32 %v1350_v22, %v1503_v61 }
 0x7d6   :  { %v725_v26 = vmul.f32 %v1087_v23, %v719_v24 }
 0x7d7   :  { %v1352_v27 = vpop.eup %1351 }
 0x7d8   :  { %v720_v28 = vmul.f32 %v1352_v27, %v1501_v60  ;;  %v731_v29 = vadd.f32 %v1088_v25, %v725_v26 }
 0x7da   :  { %v726_v30 = vmul.f32 %v1087_v23, %v720_v28  ;;  %1272 = vmatprep.mubr.msk.f32.mxu1 %vm162_vm2, %v731_v29 }
 0x7dc   :  { %v732_v31 = vadd.f32 %v1088_v25, %v726_v30 }
 0x7de   :  { %1273 = vmatmul.mubr.msk.f32.vlgmr.msra.gmra.mxu1 %vm162_vm2, %v732_v31 }
 0x7df   :  { %1311 = vmatpush3.msra.mxu1 %v968_v32 }
 0x7e0   :  { %1312 = vmatprep.subr.mxu1 %v967_v63 }
 0x7e1   :  { %1313 = vmatpush3.msra.mxu1 %v967_v63 }
 0x7e2   :  { %1314 = vmatprep.subr.mxu1 %v966_v0 }
 0x7e3   :  { %1315 = vmatpush3.msra.mxu1 %v966_v0 }
 0x7e4   :  { %1316 = vmatprep.subr.mxu1 %v965_v1 }
 0x7e5   :  { %1317 = vmatpush3.msra.mxu1 %v965_v1 }
 0x89e   :  { %v1274_v39 = vpop.f32.mrf.mxu1 }
 0x89f   :  { %v820_v40 = vadd.f32 %v1274_v39, %v1089_v38 }
 0x8a0   :  { %v814_v41 = vpop.f32.mrf.mxu1 }
 0x8a1   :  { %v815_v42 = vadd.f32 %v1089_v38, %v814_v41  ;;  %v824_v44 = vmax.f32 %v820_v40, 0.0 }
 0x8a3   :  { %v823_v43 = vmax.f32 %v815_v42, 0.0 }
 0x8a5   :  { %1307 = vmatprep.mubr.f32.mxu0 %v823_v43 }
 0x8a6   :  { %1308 = vmatmul.mubr.f32.vlgmr.msra.gmra.mxu0 %v824_v44 }
 0x966   :  { %v1309_v46 = vpop.f32.mrf.mxu0 }
 0x967   :  { %v922_v47 = vadd.f32 %v1309_v46, %v1092_v45 }
 0x968   :  { %v907_v48 = vpop.f32.mrf.mxu0 }
 0x969   :  { %v921_v49 = vadd.f32 %v1092_v45, %v907_v48  ;;  %v924_v50 = vadd.f32 %v922_v47, %v732_v31 }
 0x96b   :  { %v930_v51 = vsel %vm162_vm2, %v924_v50, 0.0  ;;  %v923_v52 = vadd.f32 %v921_v49, %v731_v29 }
 0x96c   :  { %931 = vadd.xlane.f32.xlu0 %v930_v51 }
 0x96d   :  { %v927_v53 = vsel %vm162_vm2, %v923_v52, 0.0 }
 0x96e   :  { %928 = vadd.xlane.f32.xlu1 %v927_v53 }
 0x9f5   :  { %v932_v54 = vpop.xlane.xlu0 %931 }
 0x9f6   :  { %v934_v55 = vmul.f32 0.03125, %v932_v54 }
 0x9f7   :  { %v929_v56 = vpop.xlane.xlu1 %928 }
 0x9f8   :  { %v936_v57 = vsub.f32 %v924_v50, %v934_v55  ;;  %v933_v58 = vmul.f32 0.03125, %v929_v56 }
 0x9fa   :  { %v935_v59 = vsub.f32 %v923_v52, %v933_v58  ;;  %v938_v60 = vmul.f32 %v936_v57, %v936_v57 }
 0x9fc   :  { %v942_v61 = vsel %vm162_vm2, %v938_v60, 0.0  ;;  %v937_v62 = vmul.f32 %v935_v59, %v935_v59 }
 0x9fd   :  { %943 = vadd.xlane.f32.xlu0 %v942_v61 }
 0x9fe   :  { %v939_v33 = vsel %vm162_vm2, %v937_v62, 0.0 }
 0x9ff   :  { %940 = vadd.xlane.f32.xlu1 %v939_v33 }
 0xa86   :  { %v944_v2 = vpop.xlane.xlu0 %943 }
 0xa87   :  { %v946_v3 = vmul.f32 0.03125, %v944_v2 }
 0xa88   :  { %v941_v4 = vpop.xlane.xlu1 %940 }
 0xa89   :  { %v948_v5 = vadd.f32 1e-05, %v946_v3  ;;  %v945_v6 = vmul.f32 0.03125, %v941_v4 }
 0xa8b   :  { %1353 = vrsqrt.f32 %v948_v5  ;;  %v947_v7 = vadd.f32 1e-05, %v945_v6 }
 0xa8d   :  { %1355 = vrsqrt.f32 %v947_v7 }
 0xa98   :  { %v1354_v8 = vpop.eup %1353 }
 0xa99   :  { %v952_v10 = vmul.f32 %v1354_v8, %v936_v57 }
 0xa9a   :  { %v1356_v11 = vpop.eup %1355 }
 0xa9b   :  { %v951_v12 = vmul.f32 %v1356_v11, %v935_v59  ;;  %v958_v13 = vmul.f32 %v1093_v9, %v952_v10 }
 0xa9d   :  { %v957_v15 = vmul.f32 %v1093_v9, %v951_v12  ;;  %v964_v17 = vadd.f32 %v1094_v14, %v958_v13 }
 0xa9f   :  { %v963_v16 = vadd.f32 %v1094_v14, %v957_v15 }
 0xaa1   :  { %1318 = vmatprep.mubr.msk.f32.mxu1 %vm162_vm2, %v963_v16 }
 0xaa2   :  { %1319 = vmatmul.mubr.msk.f32.vlgmr.msra.gmra.mxu1 %vm162_vm2, %v964_v17 }
 0xb62   :  { %v1320_v19 = vpop.f32.mrf.mxu1 }
 0xb63   :  { %v1052_v20 = vadd.f32 %v1320_v19, %v1095_v18 }
 0xb64   :  { %v1046_v21 = vpop.f32.mrf.mxu1 }
 0xb65   :  { %1056 = vst [vmem:[%s1530_s3 + $0x8] sm:$0xff] %v1052_v20  ;;  %v1047_v22 = vadd.f32 %v1095_v18, %v1046_v21 }
 0xb67   :  { %1055 = vst [vmem:[%s1530_s3] sm:$0xff] %v1047_v22 }
 0xb68   :  { %1061 = vsyncpa [#allocation3], 1 }
 0xb69   :  { %1062 = vsyncpa [#allocation5], 1 }

</bundles_post_ra>
